<compile_context>
chip_gen: v6e
topology: v6e:2x2x1
jax: 0.10.0
libtpu: 0.0.40
codegen_flags: <defaults>
</compile_context>

<pallas_src>
import math
import jax
import jax.numpy as jnp
from jax.experimental import pallas as pl
from jax.experimental.pallas import tpu as pltpu

LANE = 128
BF16_ROWS = 16  # bf16 sublane-packing multiple (rows per packed vreg group)


def _round_up(x, m):
    return ((x + m - 1) // m) * m


def _cdiv(a, b):
    return -(-a // b)


def _mlp_kernel(x_ref, w1_ref, b1_ref, w2_ref, b2_ref, w3_ref, b3_ref, o_ref):
    # bf16 cast happens here (VMEM -> vreg), not in the wrapper -> no extra HBM copy.
    x = x_ref[...].astype(w1_ref.dtype)
    # fc1 + ReLU : bf16 MXU inputs, f32 accumulation + f32 epilogue
    h = jnp.dot(x, w1_ref[...], preferred_element_type=jnp.float32)
    h = jnp.maximum(h + b1_ref[...], 0.0)
    # fc2 + ReLU
    h = jnp.dot(h.astype(w2_ref.dtype), w2_ref[...],
                preferred_element_type=jnp.float32)
    h = jnp.maximum(h + b2_ref[...], 0.0)
    # fc3 (no activation) -> lane-dense store
    out = jnp.dot(h.astype(w3_ref.dtype), w3_ref[...],
                  preferred_element_type=jnp.float32)
    o_ref[...] = (out + b3_ref[...]).astype(o_ref.dtype)


def prepare_params(params, compute_dtype=jnp.bfloat16):
    """Zero-pad hidden/output feature dims to multiples of 128 lanes and cast
    the weights for the MXU.  The input dim (w1 rows) is left UN-padded so the
    wrapper never has to pad x.  Padding is exact: padded weight rows/cols are
    zero, so padded outputs are discarded without affecting real outputs."""
    w1, b1, w2, b2, w3, b3 = params
    in_dim, hid = w1.shape
    out_dim = w3.shape[1]
    hid_p = _round_up(hid, LANE)
    out_p = _round_up(out_dim, LANE)

    def pad_w(w, r, c):
        return jnp.pad(w, ((0, r - w.shape[0]), (0, c - w.shape[1]))).astype(compute_dtype)

    def pad_b(b, c):
        return jnp.pad(b, ((0, 0), (0, c - b.shape[1]))).astype(jnp.float32)

    padded = (pad_w(w1, in_dim, hid_p), pad_b(b1, hid_p),
              pad_w(w2, hid_p, hid_p), pad_b(b2, hid_p),
              pad_w(w3, hid_p, out_p), pad_b(b3, out_p))
    return padded, (in_dim, out_dim)


def _choose_batch_tiling(batch, block_b, min_grid_steps):
    """Few, large grid steps (per-step overhead bound), but keep an even step
    count >= min_grid_steps when batch allows so v7x megacore shards evenly."""
    b_align = _round_up(batch, BF16_ROWS)
    n_steps = max(_cdiv(b_align, block_b), min_grid_steps)
    n_steps = max(1, min(n_steps, b_align // BF16_ROWS))   # >=16 rows per tile
    if n_steps > 1 and n_steps % 2:                         # even count for 2 TCs
        n_steps += 1
    tb = _round_up(_cdiv(b_align, n_steps), BF16_ROWS)
    return tb, n_steps, tb * n_steps


def _vmem_limit_bytes(tb, in_dim, hid_p, out_p, w_itemsize, out_itemsize):
    weight_bytes = (in_dim * hid_p + hid_p * hid_p + hid_p * out_p) * w_itemsize \
                   + (2 * hid_p + out_p) * 4
    io_bytes = tb * in_dim * 4 + tb * out_p * out_itemsize
    interm_bytes = 2 * tb * hid_p * 4            # f32 intermediates in vregs/VMEM
    est = 2 * (weight_bytes + io_bytes) + interm_bytes + (4 << 20)  # 2x = double buffering
    return int(min(max(est, 16 << 20), 64 << 20))


def world_model_forward(x, params, *, block_b=512, min_grid_steps=2,
                        compute_dtype=jnp.bfloat16, out_dtype=jnp.float32):
    """x: (B, state_dim + choice_emb_dim) f32 -> (B, state_dim) out_dtype.

    In a training loop, hoist prepare_params() so the weight pad/cast is done
    once; here it is folded into the jitted call for simplicity.
    """
    (w1, b1, w2, b2, w3, b3), (in_dim, out_dim) = prepare_params(params, compute_dtype)
    assert x.shape[1] == in_dim, (x.shape, in_dim)
    B = x.shape[0]
    hid_p = w1.shape[1]
    out_p = w3.shape[1]

    tb, n_steps, b_pad = _choose_batch_tiling(B, block_b, min_grid_steps)
    if b_pad != B:
        # Only the batch axis is padded (x keeps its real minor dim and f32
        # dtype).  Padded rows compute relu(bias) garbage; they are sliced off
        # below and must never be reused.
        x_in = jnp.pad(x, ((0, b_pad - B), (0, 0)))
    else:
        x_in = x

    flops = 2 * b_pad * (in_dim * hid_p + hid_p * hid_p + hid_p * out_p)
    bytes_accessed = (x_in.size * x_in.dtype.itemsize
                      + sum(int(a.size) * a.dtype.itemsize
                            for a in (w1, b1, w2, b2, w3, b3))
                      + b_pad * out_p * jnp.dtype(out_dtype).itemsize)

    row_spec = lambda shape: pl.BlockSpec(shape, lambda i: (i, 0))   # tiled over batch
    rep_spec = lambda shape: pl.BlockSpec(shape, lambda i: (0, 0))   # VMEM-resident

    out_padded = pl.pallas_call(
        _mlp_kernel,
        out_shape=jax.ShapeDtypeStruct((b_pad, out_p), out_dtype),
        grid=(n_steps,),
        in_specs=[
            row_spec((tb, in_dim)),                              # x, f32, unpadded K
            rep_spec((in_dim, hid_p)), rep_spec((1, hid_p)),     # fc1
            rep_spec((hid_p, hid_p)), rep_spec((1, hid_p)),      # fc2
            rep_spec((hid_p, out_p)), rep_spec((1, out_p)),      # fc3
        ],
        out_specs=row_spec((tb, out_p)),
        compiler_params=pltpu.CompilerParams(
            dimension_semantics=("parallel",),
            vmem_limit_bytes=_vmem_limit_bytes(
                tb, in_dim, hid_p, out_p,
                jnp.dtype(compute_dtype).itemsize, jnp.dtype(out_dtype).itemsize),
        ),
        cost_estimate=pl.CostEstimate(flops=flops, transcendentals=0,
                                      bytes_accessed=bytes_accessed),
    )(x_in, w1, b1, w2, b2, w3, b3)

    return out_padded[:B, :out_dim]


def init_params(key, state_dim, choice_emb_dim, hidden_dim):
    """PyTorch-style uniform(+/- 1/sqrt(fan_in)) init.

    Weights stored transposed: (in_features, out_features).  Biases: (1, out).
    """
    in_dim = state_dim + choice_emb_dim
    dims = [(in_dim, hidden_dim), (hidden_dim, hidden_dim), (hidden_dim, state_dim)]
    params = []
    for i, (fan_in, fan_out) in enumerate(dims):
        kw, kb = jax.random.split(jax.random.fold_in(key, i))
        bound = 1.0 / math.sqrt(fan_in)
        w = jax.random.uniform(kw, (fan_in, fan_out), jnp.float32, -bound, bound)
        b = jax.random.uniform(kb, (1, fan_out), jnp.float32, -bound, bound)
        params += [w, b]
    return tuple(params)


def reference_forward(x, params):
    w1, b1, w2, b2, w3, b3 = params
    h = jnp.maximum(x @ w1 + b1, 0.0)
    h = jnp.maximum(h @ w2 + b2, 0.0)
    return h @ w3 + b3


# TODO(synk): the PyTorch module's .compile() (torch.jit.script) helper has no
# Pallas equivalent; the forward pass itself is fully implemented above.

if __name__ == "__main__":
    state_dim = 16
    choice_emb_dim = 16
    hidden_dim = 128   # module default
    batch = 64         # small demo batch; tiling logic handles any B

    key = jax.random.PRNGKey(0)
    kx, kp = jax.random.split(key)
    x = jax.random.normal(kx, (batch, state_dim + choice_emb_dim), jnp.float32)
    params = init_params(kp, state_dim, choice_emb_dim, hidden_dim)

    fwd = jax.jit(world_model_forward)
    out = jax.block_until_ready(fwd(x, params))

    ref = reference_forward(x, params)
    assert out.shape == (batch, state_dim), out.shape
    # bf16 MXU weights/activations with f32 accumulation -> loose-but-meaningful tolerance.
    max_err = float(jnp.max(jnp.abs(out - ref)))
    assert jnp.allclose(out, ref, atol=3e-2, rtol=3e-2), max_err
    print("KERNEL_OK")
</pallas_src>

<mosaic_0001>
module attributes {stable_mosaic.version = 11 : i64} {
  func.func @_mlp_kernel(%arg0: i32, %arg1: memref<32x32xf32, #tpu.memory_space<vmem>>, %arg2: memref<32x128xbf16, #tpu.memory_space<vmem>>, %arg3: memref<1x128xf32, #tpu.memory_space<vmem>>, %arg4: memref<128x128xbf16, #tpu.memory_space<vmem>>, %arg5: memref<1x128xf32, #tpu.memory_space<vmem>>, %arg6: memref<128x128xbf16, #tpu.memory_space<vmem>>, %arg7: memref<1x128xf32, #tpu.memory_space<vmem>>, %arg8: memref<32x128xf32, #tpu.memory_space<vmem>>) attributes {dimension_semantics = [#tpu.dimension_semantics<parallel>], iteration_bounds = array<i64: 2>, scalar_prefetch = 0 : i64, scratch_operands = 0 : i64, tpu.core_type = #tpu.core_type<tc>, window_params = [{transform_indices = @transform_0, window_bounds = array<i64: 32, 32>}, {pipeline_mode = #tpu.pipeline_mode<synchronous>, transform_indices = @transform_1, window_bounds = array<i64: 32, 128>}, {pipeline_mode = #tpu.pipeline_mode<synchronous>, transform_indices = @transform_2, window_bounds = array<i64: 1, 128>}, {pipeline_mode = #tpu.pipeline_mode<synchronous>, transform_indices = @transform_3, window_bounds = array<i64: 128, 128>}, {pipeline_mode = #tpu.pipeline_mode<synchronous>, transform_indices = @transform_4, window_bounds = array<i64: 1, 128>}, {pipeline_mode = #tpu.pipeline_mode<synchronous>, transform_indices = @transform_5, window_bounds = array<i64: 128, 128>}, {pipeline_mode = #tpu.pipeline_mode<synchronous>, transform_indices = @transform_6, window_bounds = array<i64: 1, 128>}, {transform_indices = @transform_7, window_bounds = array<i64: 32, 128>}]} {
    %c0 = arith.constant 0 : index
    %c0_0 = arith.constant 0 : index
    %0 = vector.load %arg1[%c0, %c0_0] : memref<32x32xf32, #tpu.memory_space<vmem>>, vector<32x32xf32>
    %1 = arith.truncf %0 : vector<32x32xf32> to vector<32x32xbf16>
    %c0_1 = arith.constant 0 : index
    %c0_2 = arith.constant 0 : index
    %2 = vector.load %arg2[%c0_1, %c0_2] : memref<32x128xbf16, #tpu.memory_space<vmem>>, vector<32x128xbf16>
    %cst = arith.constant dense<0.000000e+00> : vector<32x128xf32>
    %3 = tpu.matmul %1, %2, %cst {dimension_numbers = #tpu.dot_dimension_numbers<[1], [0], [0], [1], [0, 0, 1, 1], [], []>} : vector<32x32xbf16>, vector<32x128xbf16>, vector<32x128xf32> -> vector<32x128xf32>
    %c0_3 = arith.constant 0 : index
    %c0_4 = arith.constant 0 : index
    %4 = vector.load %arg3[%c0_3, %c0_4] : memref<1x128xf32, #tpu.memory_space<vmem>>, vector<1x128xf32>
    %5 = vector.broadcast %4 : vector<1x128xf32> to vector<32x128xf32>
    %6 = arith.addf %3, %5 : vector<32x128xf32>
    %cst_5 = arith.constant 0.000000e+00 : f32
    %7 = vector.broadcast %cst_5 : f32 to vector<32x128xf32>
    %8 = arith.maximumf %6, %7 : vector<32x128xf32>
    %9 = arith.truncf %8 : vector<32x128xf32> to vector<32x128xbf16>
    %c0_6 = arith.constant 0 : index
    %c0_7 = arith.constant 0 : index
    %10 = vector.load %arg4[%c0_6, %c0_7] : memref<128x128xbf16, #tpu.memory_space<vmem>>, vector<128x128xbf16>
    %cst_8 = arith.constant dense<0.000000e+00> : vector<32x128xf32>
    %11 = tpu.matmul %9, %10, %cst_8 {dimension_numbers = #tpu.dot_dimension_numbers<[1], [0], [0], [1], [0, 0, 1, 1], [], []>} : vector<32x128xbf16>, vector<128x128xbf16>, vector<32x128xf32> -> vector<32x128xf32>
    %c0_9 = arith.constant 0 : index
    %c0_10 = arith.constant 0 : index
    %12 = vector.load %arg5[%c0_9, %c0_10] : memref<1x128xf32, #tpu.memory_space<vmem>>, vector<1x128xf32>
    %13 = vector.broadcast %12 : vector<1x128xf32> to vector<32x128xf32>
    %14 = arith.addf %11, %13 : vector<32x128xf32>
    %cst_11 = arith.constant 0.000000e+00 : f32
    %15 = vector.broadcast %cst_11 : f32 to vector<32x128xf32>
    %16 = arith.maximumf %14, %15 : vector<32x128xf32>
    %17 = arith.truncf %16 : vector<32x128xf32> to vector<32x128xbf16>
    %c0_12 = arith.constant 0 : index
    %c0_13 = arith.constant 0 : index
    %18 = vector.load %arg6[%c0_12, %c0_13] : memref<128x128xbf16, #tpu.memory_space<vmem>>, vector<128x128xbf16>
    %cst_14 = arith.constant dense<0.000000e+00> : vector<32x128xf32>
    %19 = tpu.matmul %17, %18, %cst_14 {dimension_numbers = #tpu.dot_dimension_numbers<[1], [0], [0], [1], [0, 0, 1, 1], [], []>} : vector<32x128xbf16>, vector<128x128xbf16>, vector<32x128xf32> -> vector<32x128xf32>
    %c0_15 = arith.constant 0 : index
    %c0_16 = arith.constant 0 : index
    %20 = vector.load %arg7[%c0_15, %c0_16] : memref<1x128xf32, #tpu.memory_space<vmem>>, vector<1x128xf32>
    %21 = vector.broadcast %20 : vector<1x128xf32> to vector<32x128xf32>
    %22 = arith.addf %19, %21 : vector<32x128xf32>
    %c0_17 = arith.constant 0 : index
    %c0_18 = arith.constant 0 : index
    %23 = vector.load %arg8[%c0_17, %c0_18] : memref<32x128xf32, #tpu.memory_space<vmem>>, vector<32x128xf32>
    tpu.vector_store %arg8[%c0_17, %c0_18], %22 {strides = array<i32>} : memref<32x128xf32, #tpu.memory_space<vmem>>, vector<32x128xf32>,
    return
  }
  func.func @transform_0(%arg0: i32) -> (i32, i32) {
    %c0_i32 = arith.constant 0 : i32
    %c0_i32_0 = arith.constant 0 : i32
    return %arg0, %c0_i32 : i32, i32
  }
  func.func @transform_1(%arg0: i32) -> (i32, i32) {
    %c0_i32 = arith.constant 0 : i32
    %c0_i32_0 = arith.constant 0 : i32
    %c0_i32_1 = arith.constant 0 : i32
    return %c0_i32, %c0_i32_0 : i32, i32
  }
  func.func @transform_2(%arg0: i32) -> (i32, i32) {
    %c0_i32 = arith.constant 0 : i32
    %c0_i32_0 = arith.constant 0 : i32
    %c0_i32_1 = arith.constant 0 : i32
    return %c0_i32, %c0_i32_0 : i32, i32
  }
  func.func @transform_3(%arg0: i32) -> (i32, i32) {
    %c0_i32 = arith.constant 0 : i32
    %c0_i32_0 = arith.constant 0 : i32
    %c0_i32_1 = arith.constant 0 : i32
    return %c0_i32, %c0_i32_0 : i32, i32
  }
  func.func @transform_4(%arg0: i32) -> (i32, i32) {
    %c0_i32 = arith.constant 0 : i32
    %c0_i32_0 = arith.constant 0 : i32
    %c0_i32_1 = arith.constant 0 : i32
    return %c0_i32, %c0_i32_0 : i32, i32
  }
  func.func @transform_5(%arg0: i32) -> (i32, i32) {
    %c0_i32 = arith.constant 0 : i32
    %c0_i32_0 = arith.constant 0 : i32
    %c0_i32_1 = arith.constant 0 : i32
    return %c0_i32, %c0_i32_0 : i32, i32
  }
  func.func @transform_6(%arg0: i32) -> (i32, i32) {
    %c0_i32 = arith.constant 0 : i32
    %c0_i32_0 = arith.constant 0 : i32
    %c0_i32_1 = arith.constant 0 : i32
    return %c0_i32, %c0_i32_0 : i32, i32
  }
  func.func @transform_7(%arg0: i32) -> (i32, i32) {
    %c0_i32 = arith.constant 0 : i32
    %c0_i32_0 = arith.constant 0 : i32
    return %arg0, %c0_i32 : i32, i32
  }
}

</mosaic_0001>

<bundles_post_ra>
// kernel: world_model_forward.1
= control target key start
LH: loop header
LB: loop body
LE: loop exit
PB: predicated region body
PF: predicated region fallthrough
CT: control target
= control target key end

     0   :  { %s860_s24 = smov 0   ;;  %s947_s0 = inlined_call_operand.vmem [shape: f32[64,32], index: 0, kind: input, shape index: {}]   ;;  %s948_s1 = inlined_call_operand.vmem [shape: bf16[32,128], index: 1, kind: input, shape index: {}]   ;;  %s949_s2 = inlined_call_operand.vmem [shape: f32[1,128], index: 2, kind: input, shape index: {}]   ;;  %s950_s3 = inlined_call_operand.vmem [shape: bf16[128,128], index: 3, kind: input, shape index: {}]   ;;  %s951_s4 = inlined_call_operand.vmem [shape: f32[1,128], index: 4, kind: input, shape index: {}]   ;;  %s952_s5 = inlined_call_operand.vmem [shape: bf16[128,128], index: 5, kind: input, shape index: {}]   ;;  %s953_s6 = inlined_call_operand.vmem [shape: f32[1,128], index: 6, kind: input, shape index: {}]   ;;  %s954_s7 = inlined_call_operand.vmem [shape: f32[64,128], index: 7, kind: output, shape index: {}]  }
   0x1 LB: > { %s680_s25 = sadd.s32 4294967295, %s818_s24   ;;  %p684_p0 = scmp.ge.s32.totalorder %s818_s24, 1  ;;  %s818_s24 = sphi %s860_s24, %s17_s24  }
   0x2   : > { %p238_p1 = scmp.lt.s32.totalorder %s818_s24, 3 }
   0x4   : > { %p239_p2 = pnand %p684_p0, %p238_p1 }
   0x5   : > { %s685_s28 = sshll.u32 (!%p239_p2), %s680_s25, 2 }
   0x6   : > { %242 = sbr.rel (%p239_p2) target bundleno = 634 (0x27a), region = 48  ;;  %p271_p3 = scmp.lt.s32.totalorder (!%p239_p2), %s685_s28, 7 }
   0xb   : > { %v794_v0 = vld [vmem:[%s948_s1 + $0x8] sm:$0xff]   ;;  %v795_v1 = vld [vmem:[%s948_s1] sm:$0xff]   ;;  %v796_v2 = vld [vmem:[%s950_s3 + $0x38] sm:$0xff]   ;;  %s956_s28 = smov (!%p271_p3, %s685_s28), 7  ;;  %vm312_vm0 = vcmask 261120  }
   0xc   : > { %738 = vmatprep.subr.bf16.mxu0 %v794_v0  ;;  %v797_v3 = vld [vmem:[%s950_s3 + $0x30] sm:$0xff]   ;;  %746 = vmatprep.subr.bf16.mxu1 %v796_v2  ;;  %s686_s12 = sshll.u32 %s956_s28, 3  ;;  %v798_v4 = vld [vmem:[%s950_s3 + $0x28] sm:$0xff]   ;;  %v799_v10 = vld [vmem:[%s950_s3 + $0x20] sm:$0xff]  }
   0xd   : > { %739 = vmatpush3.bf16.msra.mxu0 %v794_v0  ;;  %747 = vmatpush3.bf16.msra.mxu1 %v796_v2  ;;  %s274_s15 = scalar_lea.vmem %s947_s0, %s686_s12  ;;  %v800_v12 = vld [vmem:[%s950_s3 + $0x18] sm:$0xff]   ;;  %v801_v13 = vld [vmem:[%s950_s3 + $0x10] sm:$0xff]   ;;  %v802_v14 = vld [vmem:[%s950_s3 + $0x8] sm:$0xff]   ;;  %s280_s11 = scalar_lea.vmem %s954_s7, %s686_s12 }
   0xe   : > { %740 = vmatprep.subr.bf16.mxu0 %v795_v1  ;;  %748 = vmatprep.subr.bf16.mxu1 %v797_v3  ;;  %v283_v5 = vld [vmem:[%s274_s15] sm:$0xff]  ;;  %v284_v6 = vld [vmem:[%s274_s15 + $0x8] sm:$0xff]  ;;  %v285_v7 = vld [vmem:[%s274_s15 + $0x10] sm:$0xff] }
   0xf   : > { %v287_v8 = vpack.c.bf16 %v284_v6, %v283_v5  ;;  %v286_v9 = vld [vmem:[%s274_s15 + $0x18] sm:$0xff]  ;;  %v803_v15 = vld [vmem:[%s950_s3] sm:$0xff]   ;;  %v805_v17 = vld [vmem:[%s952_s5 + $0x30] sm:$0xff]  }
  0x10   : > { %v288_v11 = vpack.c.bf16 %v286_v9, %v285_v7  ;;  %v804_v16 = vld [vmem:[%s952_s5 + $0x38] sm:$0xff]   ;;  %v806_v18 = vld [vmem:[%s952_s5 + $0x28] sm:$0xff]   ;;  %v807_v19 = vld [vmem:[%s952_s5 + $0x20] sm:$0xff]  }
  0x11   : > { %741 = vmatpush3.bf16.msra.mxu0 %v795_v1  ;;  %749 = vmatpush3.bf16.msra.mxu1 %v797_v3  ;;  %v808_v20 = vld [vmem:[%s952_s5 + $0x18] sm:$0xff]   ;;  %v689_v23 = vld [vmem:[%s949_s2] ss:$0 sm:$0xff]  ;;  %v809_v36 = vld [vmem:[%s952_s5 + $0x10] sm:$0xff]  }
  0x12   : > { %742 = vmatprep.mubr.msk.bf16.mxu0 %vm312_vm0, %v287_v8  ;;  %750 = vmatprep.subr.bf16.mxu1 %v798_v4  ;;  %v810_v37 = vld [vmem:[%s952_s5 + $0x8] sm:$0xff]   ;;  %v811_v38 = vld [vmem:[%s952_s5] sm:$0xff]  }
  0x13   : > { %766 = vmatprep.subr.bf16.mxu0 %v804_v16  ;;  %v694_v41 = vld [vmem:[%s951_s4] ss:$0 sm:$0xff] }
  0x14   : > { %743 = vmatmul.mubr.msk.bf16.vlgmr.msra.gmra.mxu0 %vm312_vm0, %v288_v11  ;;  %v703_v55 = vld [vmem:[%s953_s6] ss:$0 sm:$0xff] }
  0x15   : > { %751 = vmatpush3.bf16.msra.mxu1 %v798_v4  ;;  %767 = vmatpush3.bf16.msra.mxu0 %v804_v16 }
  0x16   : > { %752 = vmatprep.subr.bf16.mxu1 %v799_v10  ;;  %768 = vmatprep.subr.bf16.mxu0 %v805_v17 }
  0x19   : > { %753 = vmatpush3.bf16.msra.mxu1 %v799_v10  ;;  %769 = vmatpush3.bf16.msra.mxu0 %v805_v17 }
  0x1a   : > { %754 = vmatprep.subr.bf16.mxu1 %v800_v12  ;;  %770 = vmatprep.subr.bf16.mxu0 %v806_v18 }
  0x1d   : > { %755 = vmatpush3.bf16.msra.mxu1 %v800_v12  ;;  %771 = vmatpush3.bf16.msra.mxu0 %v806_v18 }
  0x1e   : > { %756 = vmatprep.subr.bf16.mxu1 %v801_v13  ;;  %772 = vmatprep.subr.bf16.mxu0 %v807_v19 }
  0x21   : > { %757 = vmatpush3.bf16.msra.mxu1 %v801_v13  ;;  %773 = vmatpush3.bf16.msra.mxu0 %v807_v19 }
  0x22   : > { %758 = vmatprep.subr.bf16.mxu1 %v802_v14  ;;  %774 = vmatprep.subr.bf16.mxu0 %v808_v20 }
  0x25   : > { %759 = vmatpush3.bf16.msra.mxu1 %v802_v14  ;;  %775 = vmatpush3.bf16.msra.mxu0 %v808_v20 }
  0x26   : > { %760 = vmatprep.subr.bf16.mxu1 %v803_v15  ;;  %776 = vmatprep.subr.bf16.mxu0 %v809_v36 }
  0x29   : > { %761 = vmatpush3.bf16.msra.mxu1 %v803_v15  ;;  %777 = vmatpush3.bf16.msra.mxu0 %v809_v36 }
  0x2a   : > { %778 = vmatprep.subr.bf16.mxu0 %v810_v37 }
  0x2d   : > { %779 = vmatpush3.bf16.msra.mxu0 %v810_v37 }
  0x2e   : > { %780 = vmatprep.subr.bf16.mxu0 %v811_v38 }
  0x31   : > { %781 = vmatpush3.bf16.msra.mxu0 %v811_v38 }
  0xd4   : > { %v744_v21 = vpop.f32.mrf.mxu0 }
  0xd5   : > { %v362_v27 = vadd.f32 %v744_v21, %v689_v23 }
  0xd6   : > { %v353_v22 = vpop.f32.mrf.mxu0 }
  0xd7   : > { %v354_v25 = vadd.f32 %v689_v23, %v353_v22  ;;  %v370_v33 = vmax.f32 %v362_v27, 0.0 }
  0xd8   : > { %v745_v24 = vpop.f32.mrf.mxu0 }
  0xd9   : > { %v365_v26 = vadd.f32 %v745_v24, %v689_v23  ;;  %v368_v31 = vmax.f32 %v354_v25, 0.0 }
  0xda   : > { %v356_v28 = vpop.f32.mrf.mxu0 }
  0xdb   : > { %v357_v29 = vadd.f32 %v689_v23, %v356_v28  ;;  %v371_v30 = vmax.f32 %v365_v26, 0.0 }
  0xdd   : > { %v369_v32 = vmax.f32 %v357_v29, 0.0  ;;  %v373_v35 = vpack.c.bf16 %v371_v30, %v370_v33 }
  0xdf   : > { %v372_v34 = vpack.c.bf16 %v369_v32, %v368_v31 }
  0xe1   : > { %762 = vmatprep.mubr.bf16.mxu1 %v372_v34 }
  0xe2   : > { %763 = vmatmul.mubr.bf16.vlgmr.msra.gmra.mxu1 %v373_v35 }
 0x1a2   : > { %v764_v39 = vpop.f32.mrf.mxu1 }
 0x1a3   : > { %v488_v45 = vadd.f32 %v764_v39, %v694_v41 }
 0x1a4   : > { %v479_v40 = vpop.f32.mrf.mxu1 }
 0x1a5   : > { %v480_v43 = vadd.f32 %v694_v41, %v479_v40  ;;  %v496_v51 = vmax.f32 %v488_v45, 0.0 }
 0x1a6   : > { %v765_v42 = vpop.f32.mrf.mxu1 }
 0x1a7   : > { %v491_v44 = vadd.f32 %v765_v42, %v694_v41  ;;  %v494_v49 = vmax.f32 %v480_v43, 0.0 }
 0x1a8   : > { %v482_v46 = vpop.f32.mrf.mxu1 }
 0x1a9   : > { %v483_v47 = vadd.f32 %v694_v41, %v482_v46  ;;  %v497_v48 = vmax.f32 %v491_v44, 0.0 }
 0x1ab   : > { %v495_v50 = vmax.f32 %v483_v47, 0.0  ;;  %v499_v53 = vpack.c.bf16 %v497_v48, %v496_v51 }
 0x1ad   : > { %v498_v52 = vpack.c.bf16 %v495_v50, %v494_v49 }
 0x1af   : > { %782 = vmatprep.mubr.bf16.mxu0 %v498_v52 }
 0x1b0   : > { %783 = vmatmul.mubr.bf16.vlgmr.msra.gmra.mxu0 %v499_v53 }
 0x270   : > { %v784_v54 = vpop.f32.mrf.mxu0 }
 0x271   : > { %v614_v61 = vadd.f32 %v784_v54, %v703_v55 }
 0x272   : > { %v605_v56 = vpop.f32.mrf.mxu0 }
 0x273   : > { %v606_v57 = vadd.f32 %v703_v55, %v605_v56  ;;  %622 = vst [vmem:[%s280_s11 + $0x10] sm:$0xff] %v614_v61 }
 0x274   : > { %v785_v58 = vpop.f32.mrf.mxu0 }
 0x275   : > { %620 = vst [vmem:[%s280_s11] sm:$0xff] %v606_v57  ;;  %v617_v62 = vadd.f32 %v785_v58, %v703_v55 }
 0x276   : > { %v608_v59 = vpop.f32.mrf.mxu0 }
 0x277   : > { %v609_v60 = vadd.f32 %v703_v55, %v608_v59  ;;  %623 = vst [vmem:[%s280_s11 + $0x18] sm:$0xff] %v617_v62 }
 0x279   : > { %621 = vst [vmem:[%s280_s11 + $0x8] sm:$0xff] %v609_v60 }
 0x27a PF: > { %s17_s24 = sadd.s32 1, %s818_s24  }
 0x27b   : > { %p14_p4 = scmp.ge.s32.totalorder %s17_s24, 4  }
 0x27d   :  { %16 = sbr.rel (!%p14_p4) target bundleno = 1 (0x1), region = 78 }

</bundles_post_ra>
